<compile_context>
chip_gen: v6e
topology: v6e:2x2x1
jax: 0.10.0
libtpu: 0.0.40
codegen_flags: <defaults>
</compile_context>

<pallas_src>
import functools

import jax
import jax.numpy as jnp
from jax.experimental import pallas as pl
from jax.experimental.pallas import tpu as pltpu


# ---------------------------------------------------------------------------
# Kernel
# ---------------------------------------------------------------------------
def _discriminator_kernel(x_ref, pp_ref, w1_ref, w2_ref, out_ref):
  """One batch tile, fully transposed (batch on lanes).

  x_ref  : [K, TB]      packed (obs | acs | obs_next | ones), compute dtype
  pp_ref : [1, TB]      path_probs (log_q_tau), f32
  w1_ref : [H3, K]      packed first-layer weights (+bias column), compute dtype
  w2_ref : [8, H3]      packed second layer; row 0 produces log_p_tau, f32
  out_ref: [4, TB]      rows = (log_q | log_p | log_pq | discrim), f32
  """
  f32 = jnp.float32

  x = x_ref[...]                                               # [K, TB]
  # First layer for all three MLP branches + constant unit, one MXU pass.
  h = jnp.maximum(
      jnp.dot(w1_ref[...], x, preferred_element_type=f32), 0.0)  # [H3, TB]
  # Second layer; row 0 of the result is log_p_tau (gamma/bias folded in).
  p2 = jnp.dot(w2_ref[...], h, preferred_element_type=f32)       # [8, TB]

  log_p_tau = p2[0:1, :]                                         # [1, TB]
  log_q_tau = pp_ref[...]                                        # [1, TB]

  # Stable logsumexp over the pair, guarded against both inputs = -inf.
  m = jnp.maximum(log_p_tau, log_q_tau)
  d = -jnp.abs(log_p_tau - log_q_tau)
  d = jnp.where(m == -jnp.inf, 0.0, d)
  log_pq = m + jnp.log(1.0 + jnp.exp(d))
  discrim_output = jnp.exp(log_p_tau - log_pq)

  out_ref[...] = jnp.concatenate(
      [log_q_tau, log_p_tau, log_pq, discrim_output], axis=0)    # [4, TB]


# ---------------------------------------------------------------------------
# Parameter / input packing
# ---------------------------------------------------------------------------
def _pack_params(params, *, ob_dim, ac_dim, gamma, state_only, compute_dtype):
  """Pack the 8 weight/bias arrays into two small transposed VMEM blocks."""
  w1r, b1r, w2r, b2r, w1v, b1v, w2v, b2v = [p.astype(jnp.float32) for p in params]
  hidden = w1r.shape[1]
  k_x = (2 * ob_dim + 1) if state_only else (2 * ob_dim + ac_dim + 1)
  h3 = 3 * hidden + 1                       # +1 constant unit
  h3p = ((h3 + 7) // 8) * 8                 # sublane-align

  # ---- first layer: W1^T [h3p, k_x]; bias in the last ("ones") column ------
  w1t = jnp.zeros((h3p, k_x), jnp.float32)
  # reward net hidden rows
  w1t = w1t.at[0:hidden, 0:ob_dim].set(w1r[0:ob_dim, :].T)
  obs_next_col = ob_dim
  if not state_only:
    w1t = w1t.at[0:hidden, ob_dim:ob_dim + ac_dim].set(
        w1r[ob_dim:ob_dim + ac_dim, :].T)
    obs_next_col = ob_dim + ac_dim
  # value net on obs
  w1t = w1t.at[hidden:2 * hidden, 0:ob_dim].set(w1v.T)
  # value net on obs_next
  w1t = w1t.at[2 * hidden:3 * hidden,
               obs_next_col:obs_next_col + ob_dim].set(w1v.T)
  # biases via the ones lane
  w1t = w1t.at[0:hidden, k_x - 1].set(b1r[0, :])
  w1t = w1t.at[hidden:2 * hidden, k_x - 1].set(b1v[0, :])
  w1t = w1t.at[2 * hidden:3 * hidden, k_x - 1].set(b1v[0, :])
  w1t = w1t.at[3 * hidden, k_x - 1].set(1.0)   # constant unit: relu(1) = 1

  # ---- second layer: row 0 yields log_p_tau = reward + g*v_next - v --------
  c0 = b2r.reshape(()) + (gamma - 1.0) * b2v.reshape(())
  w2p = jnp.zeros((8, h3p), jnp.float32)
  w2p = w2p.at[0, 0:hidden].set(w2r[:, 0])
  w2p = w2p.at[0, hidden:2 * hidden].set(-w2v[:, 0])
  w2p = w2p.at[0, 2 * hidden:3 * hidden].set(gamma * w2v[:, 0])
  w2p = w2p.at[0, 3 * hidden].set(c0)

  return w1t.astype(compute_dtype), w2p


def _pack_inputs(obs, acs, obs_next, path_probs, *, state_only, bp,
                 compute_dtype):
  """Build the transposed packed activation block and the log_q row."""
  batch = obs.shape[0]
  ones = jnp.ones((batch, 1), jnp.float32)
  pieces = [obs, obs_next, ones] if state_only else [obs, acs, obs_next, ones]
  xp = jnp.concatenate(pieces, axis=1)                      # [B, K]
  pp = path_probs.reshape(batch, 1)
  if bp != batch:
    pad = bp - batch
    xp = jnp.pad(xp, ((0, pad), (0, 0)))
    pp = jnp.pad(pp, ((0, pad), (0, 0)))
  return xp.T.astype(compute_dtype), pp.T.astype(jnp.float32)


def _choose_batch_tile(batch, batch_tile):
  """Lane-aligned batch tile; keep >=2 grid steps for v7x when possible."""
  max_tb = pl.cdiv(batch, 128) * 128
  tb = min(int(batch_tile), max_tb)
  if batch > 128:
    half = pl.cdiv(pl.cdiv(batch, 2), 128) * 128
    tb = min(tb, half)
  tb = max(128, (tb // 128) * 128)
  nb = pl.cdiv(batch, tb)
  return tb, nb, nb * tb


# ---------------------------------------------------------------------------
# Public forward
# ---------------------------------------------------------------------------
def discriminator_forward(obs, acs, obs_next, path_probs, params, *,
                          gamma=0.99, state_only=False,
                          compute_dtype=jnp.float32, batch_tile=8192,
                          return_packed=False):
  """Pallas implementation of Discriminator.forward.

  Returns (log_q_tau, log_p_tau, log_pq, discrim_output), each [B, 1] f32,
  or a packed [4, B] f32 array if return_packed=True.
  """
  obs = obs.astype(jnp.float32)
  obs_next = obs_next.astype(jnp.float32)
  path_probs = path_probs.astype(jnp.float32)
  if not state_only:
    acs = acs.astype(jnp.float32)

  batch, ob_dim = obs.shape
  ac_dim = 0 if state_only else acs.shape[1]
  k_x = (2 * ob_dim + 1) if state_only else (2 * ob_dim + ac_dim + 1)

  w1t, w2p = _pack_params(params, ob_dim=ob_dim, ac_dim=ac_dim,
                          gamma=float(gamma), state_only=state_only,
                          compute_dtype=compute_dtype)
  h3p = w1t.shape[0]

  tb, nb, bp = _choose_batch_tile(batch, batch_tile)
  xp_t, pp_t = _pack_inputs(obs, acs, obs_next, path_probs,
                            state_only=state_only, bp=bp,
                            compute_dtype=compute_dtype)

  packed = pl.pallas_call(
      _discriminator_kernel,
      out_shape=jax.ShapeDtypeStruct((4, bp), jnp.float32),
      grid=(nb,),
      in_specs=[
          pl.BlockSpec((k_x, tb), lambda i: (0, i)),     # packed activations
          pl.BlockSpec((1, tb), lambda i: (0, i)),       # path_probs row
          pl.BlockSpec((h3p, k_x), lambda i: (0, 0)),    # W1^T (resident)
          pl.BlockSpec((8, h3p), lambda i: (0, 0)),      # W2   (resident)
      ],
      out_specs=pl.BlockSpec((4, tb), lambda i: (0, i)),
      compiler_params=pltpu.CompilerParams(
          dimension_semantics=("parallel",)),
  )(xp_t, pp_t, w1t, w2p)

  packed = packed[:, :batch]                              # drop padded columns
  if return_packed:
    return packed
  return (packed[0:1, :].T, packed[1:2, :].T,
          packed[2:3, :].T, packed[3:4, :].T)


# ---------------------------------------------------------------------------
# Params init + pure-JAX reference (mirrors the PyTorch module)
# ---------------------------------------------------------------------------
def init_params(key, ob_shape, ac_shape, hidden_size, state_only=False):
  """Shapes match the PyTorch Linears (W stored [in,out], b stored [1,out])."""
  rew_in_dim = ob_shape if state_only else ob_shape + ac_shape
  ks = jax.random.split(key, 8)

  def lin(kw, kb, fan_in, fan_out):
    bound = 1.0 / jnp.sqrt(fan_in)
    w = jax.random.uniform(kw, (fan_in, fan_out), jnp.float32, -bound, bound)
    b = jax.random.uniform(kb, (1, fan_out), jnp.float32, -bound, bound)
    return w, b

  w1r, b1r = lin(ks[0], ks[1], rew_in_dim, hidden_size)
  w2r, b2r = lin(ks[2], ks[3], hidden_size, 1)
  w1v, b1v = lin(ks[4], ks[5], ob_shape, hidden_size)
  w2v, b2v = lin(ks[6], ks[7], hidden_size, 1)
  return (w1r, b1r, w2r, b2r, w1v, b1v, w2v, b2v)


def _reference_forward(obs, acs, obs_next, path_probs, params,
                       *, gamma=0.99, state_only=False):
  (w1r, b1r, w2r, b2r, w1v, b1v, w2v, b2v) = params
  rew_in = obs if state_only else jnp.concatenate([obs, acs], axis=1)

  def mlp(x, w1, b1, w2, b2):
    return jnp.maximum(x @ w1 + b1, 0.0) @ w2 + b2

  reward = mlp(rew_in, w1r, b1r, w2r, b2r)
  value_fn = mlp(obs, w1v, b1v, w2v, b2v)
  value_fn_next = mlp(obs_next, w1v, b1v, w2v, b2v)
  log_q_tau = path_probs
  log_p_tau = reward + gamma * value_fn_next - value_fn
  log_pq = jax.scipy.special.logsumexp(
      jnp.stack([log_p_tau, log_q_tau]), axis=0)
  discrim_output = jnp.exp(log_p_tau - log_pq)
  return log_q_tau, log_p_tau, log_pq, discrim_output


# ---------------------------------------------------------------------------
# Demo / self-test
# ---------------------------------------------------------------------------
if __name__ == "__main__":
  # Small, module-consistent shapes; B=256 with batch_tile=1024 still yields
  # two 128-wide grid steps (tile chooser keeps nb>=2 for v7x megacore).
  B, OB, AC, HIDDEN = 256, 16, 8, 32
  GAMMA = 0.99

  key = jax.random.PRNGKey(0)
  k_obs, k_acs, k_next, k_pp, k_params = jax.random.split(key, 5)

  obs = jax.random.normal(k_obs, (B, OB), jnp.float32)
  acs = jax.random.normal(k_acs, (B, AC), jnp.float32)
  obs_next = jax.random.normal(k_next, (B, OB), jnp.float32)
  # path_probs are log-probabilities -> negative values.
  path_probs = -jnp.abs(jax.random.normal(k_pp, (B, 1), jnp.float32))

  params = init_params(k_params, OB, AC, HIDDEN, state_only=False)
  refs = _reference_forward(obs, acs, obs_next, path_probs, params,
                            gamma=GAMMA, state_only=False)

  # f32 path.
  fwd_f32 = jax.jit(functools.partial(
      discriminator_forward, gamma=GAMMA, state_only=False,
      compute_dtype=jnp.float32, batch_tile=1024))
  outs_f32 = jax.block_until_ready(fwd_f32(obs, acs, obs_next, path_probs,
                                           params))
  for o, r in zip(outs_f32, refs):
    assert o.shape == (B, 1) and o.dtype == jnp.float32
    assert jnp.allclose(o, r, atol=1e-4, rtol=1e-4), "f32 mismatch"

  # bf16 activations + weights on the MXU, f32 accumulation + f32 epilogue.
  fwd_bf16 = jax.jit(functools.partial(
      discriminator_forward, gamma=GAMMA, state_only=False,
      compute_dtype=jnp.bfloat16, batch_tile=1024))
  outs_bf16 = jax.block_until_ready(fwd_bf16(obs, acs, obs_next, path_probs,
                                             params))
  for o, r in zip(outs_bf16, refs):
    assert o.shape == (B, 1) and o.dtype == jnp.float32
    assert jnp.allclose(o, r, atol=5e-2, rtol=5e-2), "bf16 mismatch"

  # state_only path (acs dropped from the packed input entirely).
  params_so = init_params(k_params, OB, AC, HIDDEN, state_only=True)
  refs_so = _reference_forward(obs, acs, obs_next, path_probs, params_so,
                               gamma=GAMMA, state_only=True)
  fwd_so = jax.jit(functools.partial(
      discriminator_forward, gamma=GAMMA, state_only=True,
      compute_dtype=jnp.float32, batch_tile=1024))
  outs_so = jax.block_until_ready(fwd_so(obs, acs, obs_next, path_probs,
                                         params_so))
  for o, r in zip(outs_so, refs_so):
    assert jnp.allclose(o, r, atol=1e-4, rtol=1e-4), "state_only mismatch"

  print("KERNEL_OK")
</pallas_src>

<mosaic_0001>
module attributes {stable_mosaic.version = 11 : i64} {
  func.func @_discriminator_kernel(%arg0: i32, %arg1: memref<41x128xf32, #tpu.memory_space<vmem>>, %arg2: memref<1x128xf32, #tpu.memory_space<vmem>>, %arg3: memref<104x41xf32, #tpu.memory_space<vmem>>, %arg4: memref<8x104xf32, #tpu.memory_space<vmem>>, %arg5: memref<4x128xf32, #tpu.memory_space<vmem>>) attributes {dimension_semantics = [#tpu.dimension_semantics<parallel>], iteration_bounds = array<i64: 2>, scalar_prefetch = 0 : i64, scratch_operands = 0 : i64, tpu.core_type = #tpu.core_type<tc>, window_params = [{transform_indices = @transform_0, window_bounds = array<i64: 41, 128>}, {transform_indices = @transform_1, window_bounds = array<i64: 1, 128>}, {pipeline_mode = #tpu.pipeline_mode<synchronous>, transform_indices = @transform_2, window_bounds = array<i64: 104, 41>}, {pipeline_mode = #tpu.pipeline_mode<synchronous>, transform_indices = @transform_3, window_bounds = array<i64: 8, 104>}, {transform_indices = @transform_4, window_bounds = array<i64: 4, 128>}]} {
    %c0 = arith.constant 0 : index
    %c0_0 = arith.constant 0 : index
    %0 = vector.load %arg1[%c0, %c0_0] : memref<41x128xf32, #tpu.memory_space<vmem>>, vector<41x128xf32>
    %c0_1 = arith.constant 0 : index
    %c0_2 = arith.constant 0 : index
    %1 = vector.load %arg3[%c0_1, %c0_2] : memref<104x41xf32, #tpu.memory_space<vmem>>, vector<104x41xf32>
    %cst = arith.constant dense<0.000000e+00> : vector<104x128xf32>
    %2 = tpu.matmul %1, %0, %cst {dimension_numbers = #tpu.dot_dimension_numbers<[1], [0], [0], [1], [0, 0, 1, 1], [], []>} : vector<104x41xf32>, vector<41x128xf32>, vector<104x128xf32> -> vector<104x128xf32>
    %cst_3 = arith.constant 0.000000e+00 : f32
    %3 = vector.broadcast %cst_3 : f32 to vector<104x128xf32>
    %4 = arith.maximumf %2, %3 : vector<104x128xf32>
    %c0_4 = arith.constant 0 : index
    %c0_5 = arith.constant 0 : index
    %5 = vector.load %arg4[%c0_4, %c0_5] : memref<8x104xf32, #tpu.memory_space<vmem>>, vector<8x104xf32>
    %cst_6 = arith.constant dense<0.000000e+00> : vector<8x128xf32>
    %6 = tpu.matmul %5, %4, %cst_6 {dimension_numbers = #tpu.dot_dimension_numbers<[1], [0], [0], [1], [0, 0, 1, 1], [], []>} : vector<8x104xf32>, vector<104x128xf32>, vector<8x128xf32> -> vector<8x128xf32>
    %7 = vector.extract_strided_slice %6 {offsets = [0, 0], sizes = [1, 128], strides = [1, 1]} : vector<8x128xf32> to vector<1x128xf32>
    %c0_7 = arith.constant 0 : index
    %c0_8 = arith.constant 0 : index
    %8 = vector.load %arg2[%c0_7, %c0_8] : memref<1x128xf32, #tpu.memory_space<vmem>>, vector<1x128xf32>
    %9 = arith.maximumf %7, %8 : vector<1x128xf32>
    %10 = arith.subf %7, %8 : vector<1x128xf32>
    %11 = math.absf %10 : vector<1x128xf32>
    %cst_9 = arith.constant 0.000000e+00 : f32
    %12 = vector.broadcast %cst_9 : f32 to vector<1x128xf32>
    %13 = arith.subf %12, %11 : vector<1x128xf32>
    %cst_10 = arith.constant 0xFF800000 : f32
    %14 = vector.broadcast %cst_10 : f32 to vector<1x128xf32>
    %15 = arith.cmpf oeq, %9, %14 : vector<1x128xf32>
    %cst_11 = arith.constant 0.000000e+00 : f32
    %16 = vector.broadcast %cst_11 : f32 to vector<1x128xf32>
    %17 = arith.select %15, %16, %13 : vector<1x128xi1>, vector<1x128xf32>
    %18 = math.exp %17 : vector<1x128xf32>
    %cst_12 = arith.constant 1.000000e+00 : f32
    %19 = vector.broadcast %cst_12 : f32 to vector<1x128xf32>
    %20 = arith.addf %19, %18 : vector<1x128xf32>
    %21 = math.log %20 : vector<1x128xf32>
    %22 = arith.addf %9, %21 : vector<1x128xf32>
    %23 = arith.subf %7, %22 : vector<1x128xf32>
    %24 = math.exp %23 : vector<1x128xf32>
    %25 = tpu.concatenate %8, %7, %22, %24 in 0 : vector<1x128xf32>, vector<1x128xf32>, vector<1x128xf32>, vector<1x128xf32> -> vector<4x128xf32>
    %c0_13 = arith.constant 0 : index
    %c0_14 = arith.constant 0 : index
    %26 = vector.load %arg5[%c0_13, %c0_14] : memref<4x128xf32, #tpu.memory_space<vmem>>, vector<4x128xf32>
    tpu.vector_store %arg5[%c0_13, %c0_14], %25 {strides = array<i32>} : memref<4x128xf32, #tpu.memory_space<vmem>>, vector<4x128xf32>,
    return
  }
  func.func @transform_0(%arg0: i32) -> (i32, i32) {
    %c0_i32 = arith.constant 0 : i32
    %c0_i32_0 = arith.constant 0 : i32
    return %c0_i32, %arg0 : i32, i32
  }
  func.func @transform_1(%arg0: i32) -> (i32, i32) {
    %c0_i32 = arith.constant 0 : i32
    %c0_i32_0 = arith.constant 0 : i32
    return %c0_i32, %arg0 : i32, i32
  }
  func.func @transform_2(%arg0: i32) -> (i32, i32) {
    %c0_i32 = arith.constant 0 : i32
    %c0_i32_0 = arith.constant 0 : i32
    %c0_i32_1 = arith.constant 0 : i32
    return %c0_i32, %c0_i32_0 : i32, i32
  }
  func.func @transform_3(%arg0: i32) -> (i32, i32) {
    %c0_i32 = arith.constant 0 : i32
    %c0_i32_0 = arith.constant 0 : i32
    %c0_i32_1 = arith.constant 0 : i32
    return %c0_i32, %c0_i32_0 : i32, i32
  }
  func.func @transform_4(%arg0: i32) -> (i32, i32) {
    %c0_i32 = arith.constant 0 : i32
    %c0_i32_0 = arith.constant 0 : i32
    return %c0_i32, %arg0 : i32, i32
  }
}

</mosaic_0001>

<bundles_post_ra>
// kernel: discriminator_forward.1
= control target key start
LH: loop header
LB: loop body
LE: loop exit
PB: predicated region body
PF: predicated region fallthrough
CT: control target
= control target key end

     0   :  { %s867_s15 = smov 0   ;;  %s869_s16 = smov 0   ;;  %s1035_s0 = inlined_call_operand.vmem [shape: f32[41,256], index: 0, kind: input, shape index: {}]   ;;  %s1036_s1 = inlined_call_operand.vmem [shape: f32[1,256], index: 1, kind: input, shape index: {}]   ;;  %s1037_s2 = inlined_call_operand.vmem [shape: f32[104,41], index: 2, kind: input, shape index: {}]   ;;  %s1038_s3 = inlined_call_operand.vmem [shape: f32[8,104], index: 3, kind: input, shape index: {}]   ;;  %s1039_s4 = inlined_call_operand.vmem [shape: f32[4,256], index: 4, kind: output, shape index: {}]  }
   0x1   :  { %s871_s17 = smov 0  }
   0x2 LB: > { %s645_s18 = sadd.s32 4294967295, %s838_s17   ;;  %s884_s19 = sadd.s32 1, %s838_s17   ;;  %s838_s17 = sphi %s871_s17, %s1042_s17   ;;  %s834_s16 = sphi %s869_s16, %s1041_s16   ;;  %s830_s15 = sphi %s867_s15, %s1040_s15  }
   0x3   : > { %s18_s20 = ssub.s32 %s838_s17, %s884_s19  ;;  %s21_s21 = sadd.s32 1, %s834_s16 }
   0x4   : > { %p19_p0 = scmp.eq.s32.totalorder %s18_s20, 0  ;;  %p28_p1 = scmp.ne.s32.totalorder %s834_s16, %s830_s15 }
   0x5   : > { %p29_p2 = scmp.eq.s32.totalorder %s838_s17, 0  ;;  %p648_p4 = scmp.ge.s32.totalorder %s838_s17, 2 }
   0x6   : > { %s893_s22 = scalar_select %p19_p0, %s834_s16, %s21_s21  }
   0x7   : > { %p30_p3 = por %p29_p2, %p28_p1  ;;  %154 = sbr.rel (%p648_p4) target bundleno = 19 (0x13), region = 24 }
   0xc   : > { %157 = sbr.rel (!%p30_p3) target bundleno = 19 (0x13), region = 28  ;;  %s159_s23 = sand.u32 (%p30_p3), 1, %s834_s16  }
   0xd   : > { %s649_s24 = sshll.u32 (%p30_p3), %s838_s17, 3  ;;  %s782_s25 = smul.u32 (%p30_p3), 48, %s159_s23 }
   0xe   : > { %s163_s28 = scalar_lea.vmem (%p30_p3), %s1035_s0, %s649_s24 }
   0xf   : > { %v202_v0 = vld [vmem:[%s163_s28] sm:$0xff] (%p30_p3)  ;;  %v204_v1 = vld [vmem:[%s163_s28 + $0x10] sm:$0xff] (%p30_p3)  ;;  %s161_s29 = scalar_lea.vmem (%p30_p3), [#allocation2], %s782_s25 }
  0x10   : > { %v206_v2 = vld [vmem:[%s163_s28 + $0x20] sm:$0xff] (%p30_p3)  ;;  %v208_v3 = vld [vmem:[%s163_s28 + $0x30] sm:$0xff] (%p30_p3)  ;;  %203 = vst [vmem:[%s161_s29] sm:$0xff] (%p30_p3), %v202_v0  ;;  %205 = vst [vmem:[%s161_s29 + $0x8] sm:$0xff] (%p30_p3), %v204_v1 }
  0x11   : > { %v210_v4 = vld [vmem:[%s163_s28 + $0x40] sm:$0xff]  ;;  %v212_v5 = vld [vmem:[%s163_s28 + $0x50] sm:$0xff]  ;;  %207 = vst [vmem:[%s161_s29 + $0x10] sm:$0xff] %v206_v2  ;;  %209 = vst [vmem:[%s161_s29 + $0x18] sm:$0xff] %v208_v3 }
  0x12   : > { %211 = vst [vmem:[%s161_s29 + $0x20] sm:$0xff] %v210_v4  ;;  %213 = vst [vmem:[%s161_s29 + $0x28] sm:$0xff] %v212_v5 }
  0x13 PF: > { %p650_p5 = scmp.ge.s32.totalorder %s838_s17, 1  ;;  %p224_p6 = scmp.lt.s32.totalorder %s838_s17, 3 }
  0x15   : > { %p225_p7 = pnand %p650_p5, %p224_p6 }
  0x16   : > { %s231_s30 = sand.u32 (!%p225_p7), 1, %s830_s15   ;;  %p258_p8 = scmp.lt.s32.totalorder (!%p225_p7), %s645_s18, 1 }
  0x17   : > { %228 = sbr.rel (%p225_p7) target bundleno = 568 (0x238), region = 70 }
  0x18   : > { %s783_s5 = smul.u32 (!%p225_p7), 48, %s231_s30 }
  0x1a   : > { %s233_s6 = scalar_lea.vmem (!%p225_p7), [#allocation2], %s783_s5 }
  0x1c   : > { %v840_v6 = vmov 0.0   ;;  %vm841_vm0 = vmmov 0   ;;  %vm324_vm1 = vcmask 1040384   ;;  %v270_v7 = vld [vmem:[%s233_s6 + $0x28] sm:$0x1]  ;;  %v269_v8 = vld [vmem:[%s233_s6 + $0x20] sm:$0xff] }
  0x1d   : > { %702 = vmatprep.subr.mxu0 %v840_v6  ;;  %714 = vmatprep.mubr.msk.f32.mxu0 %vm841_vm0, %v840_v6  ;;  %v268_v9 = vld [vmem:[%s233_s6 + $0x18] sm:$0xff]  ;;  %v267_v10 = vld [vmem:[%s233_s6 + $0x10] sm:$0xff]  ;;  %v266_v11 = vld [vmem:[%s233_s6 + $0x8] sm:$0xff]  ;;  %vm284_vm2 = vcmask 334848   ;;  %vm472_vm3 = vcmask 850944   ;;  %s1044_s18 = smov (!%p258_p8, %s645_s18), 1 }
  0x1e   : > { %753 = vmatprep.subr.mxu1 %v840_v6  ;;  %779 = vmatprep.mubr.msk.f32.mxu1 %vm841_vm0, %v840_v6  ;;  %v265_v12 = vld [vmem:[%s233_s6] sm:$0xff]  ;;  %v272_v14 = vld [vmem:[%s1037_s2 + $0x8] sm:$0xff]  ;;  %v274_v16 = vld [vmem:[%s1037_s2 + $0x18] sm:$0xff]  ;;  %s260_s20 = scalar_lea.vmem %s1036_s1, %s1044_s18  ;;  %s651_s17 = sshll.u32 %s1044_s18, 2  ;;  %vm572_vm5 = vcmask 1041408   ;;  %vm574_vm6 = vcmask 1042432  }
  0x1f   : > { %703 = vmatpush3.msk.msra.mxu0 %vm324_vm1, %v270_v7  ;;  %v271_v13 = vld [vmem:[%s1037_s2] sm:$0xff]  ;;  %v273_v15 = vld [vmem:[%s1037_s2 + $0x10] sm:$0xff]  ;;  %v276_v18 = vld [vmem:[%s1037_s2 + $0x28] sm:$0xff]  ;;  %s264_s24 = scalar_lea.vmem %s1039_s4, %s651_s17 }
  0x20   : > { %704 = vmatprep.subr.mxu0 %v840_v6  ;;  %v275_v17 = vld [vmem:[%s1037_s2 + $0x20] sm:$0xff]  ;;  %v277_v19 = vld [vmem:[%s1037_s2 + $0x30] sm:$0xff]  ;;  %v278_v20 = vld [vmem:[%s1037_s2 + $0x38] sm:$0xff] }
  0x21   : > { %705 = vmatpush3.msra.mxu0 %v269_v8  ;;  %v279_v21 = vld [vmem:[%s1037_s2 + $0x40] sm:$0xff]  ;;  %v280_v22 = vld [vmem:[%s1037_s2 + $0x48] sm:$0xff]  ;;  %v281_v23 = vld [vmem:[%s1037_s2 + $0x50] sm:$0xff] }
  0x22   : > { %706 = vmatprep.subr.mxu0 %v840_v6  ;;  %v282_v24 = vld [vmem:[%s1037_s2 + $0x58] sm:$0xff]  ;;  %v283_v25 = vld [vmem:[%s1037_s2 + $0x60] sm:$0xff] }
  0x23   : > { %707 = vmatpush3.msra.mxu0 %v268_v9  ;;  %v471_v1 = vld [vmem:[%s1038_s3] sm:$0xff] }
  0x24   : > { %708 = vmatprep.subr.mxu0 %v840_v6  ;;  %v546_v2 = vld [vmem:[%s260_s20] sm:$0x1] }
  0x25   : > { %709 = vmatpush3.msra.mxu0 %v267_v10 }
  0x26   : > { %710 = vmatprep.subr.mxu0 %v840_v6 }
  0x27   : > { %711 = vmatpush3.msra.mxu0 %v266_v11 }
  0x28   : > { %712 = vmatprep.subr.mxu0 %v840_v6 }
  0x29   : > { %713 = vmatpush3.msra.mxu0 %v265_v12 }
  0x2a   : > { %715 = vmatmul.mubr.msk.f32.vlgmr.msra.gmra.mxu0 %vm284_vm2, %v271_v13 }
  0x2b   : > { %717 = vmatprep.mubr.msk.f32.mxu0 %vm841_vm0, %v840_v6 }
  0x2e   : > { %718 = vmatmul.mubr.msk.f32.gmra.mxu0 %vm284_vm2, %v272_v14 }
  0x2f   : > { %720 = vmatprep.mubr.msk.f32.mxu0 %vm841_vm0, %v840_v6 }
  0x32   : > { %721 = vmatmul.mubr.msk.f32.gmra.mxu0 %vm284_vm2, %v273_v15 }
  0x33   : > { %723 = vmatprep.mubr.msk.f32.mxu0 %vm841_vm0, %v840_v6 }
  0x36   : > { %724 = vmatmul.mubr.msk.f32.gmra.mxu0 %vm284_vm2, %v274_v16 }
  0x37   : > { %726 = vmatprep.mubr.msk.f32.mxu0 %vm841_vm0, %v840_v6 }
  0x3a   : > { %727 = vmatmul.mubr.msk.f32.gmra.mxu0 %vm284_vm2, %v275_v17 }
  0x3b   : > { %729 = vmatprep.mubr.msk.f32.mxu0 %vm841_vm0, %v840_v6 }
  0x3e   : > { %730 = vmatmul.mubr.msk.f32.gmra.mxu0 %vm284_vm2, %v276_v18 }
  0x3f   : > { %732 = vmatprep.mubr.msk.f32.mxu0 %vm841_vm0, %v840_v6 }
  0x42   : > { %733 = vmatmul.mubr.msk.f32.gmra.mxu0 %vm284_vm2, %v277_v19 }
  0x43   : > { %735 = vmatprep.mubr.msk.f32.mxu0 %vm841_vm0, %v840_v6 }
  0x46   : > { %736 = vmatmul.mubr.msk.f32.gmra.mxu0 %vm284_vm2, %v278_v20 }
  0x47   : > { %738 = vmatprep.mubr.msk.f32.mxu0 %vm841_vm0, %v840_v6 }
  0x4a   : > { %739 = vmatmul.mubr.msk.f32.gmra.mxu0 %vm284_vm2, %v279_v21 }
  0x4b   : > { %741 = vmatprep.mubr.msk.f32.mxu0 %vm841_vm0, %v840_v6 }
  0x4e   : > { %742 = vmatmul.mubr.msk.f32.gmra.mxu0 %vm284_vm2, %v280_v22 }
  0x4f   : > { %744 = vmatprep.mubr.msk.f32.mxu0 %vm841_vm0, %v840_v6 }
  0x52   : > { %745 = vmatmul.mubr.msk.f32.gmra.mxu0 %vm284_vm2, %v281_v23 }
  0x53   : > { %747 = vmatprep.mubr.msk.f32.mxu0 %vm841_vm0, %v840_v6 }
  0x56   : > { %748 = vmatmul.mubr.msk.f32.gmra.mxu0 %vm284_vm2, %v282_v24 }
  0x57   : > { %750 = vmatprep.mubr.msk.f32.mxu0 %vm841_vm0, %v840_v6 }
  0x5a   : > { %751 = vmatmul.mubr.msk.f32.gmra.mxu0 %vm284_vm2, %v283_v25 }
  0xea   : > { %v992_v26 = vpop.f32.mrf.mxu0 }
  0xeb   : > { %v458_v0 = vmax.f32 %v992_v26, 0.0 }
  0xec   : > { %v716_v27 = vpop.f32.mrf.mxu0 }
  0xee   : > { %v399_v28 = vpop.f32.mrf.mxu0 }
  0xef   : > { %v459_v63 = vmax.f32 %v399_v28, 0.0 }
  0xf0   : > { %v719_v29 = vpop.f32.mrf.mxu0 }
  0xf2   : > { %v404_v30 = vpop.f32.mrf.mxu0 }
  0xf3   : > { %v460_v62 = vmax.f32 %v404_v30, 0.0 }
  0xf4   : > { %v722_v31 = vpop.f32.mrf.mxu0 }
  0xf6   : > { %v409_v32 = vpop.f32.mrf.mxu0 }
  0xf7   : > { %v461_v61 = vmax.f32 %v409_v32, 0.0 }
  0xf8   : > { %v725_v33 = vpop.f32.mrf.mxu0 }
  0xfa   : > { %v414_v34 = vpop.f32.mrf.mxu0 }
  0xfb   : > { %v462_v60 = vmax.f32 %v414_v34, 0.0 }
  0xfc   : > { %v728_v35 = vpop.f32.mrf.mxu0 }
  0xfe   : > { %v419_v36 = vpop.f32.mrf.mxu0 }
  0xff   : > { %v463_v59 = vmax.f32 %v419_v36, 0.0 }
 0x100   : > { %v731_v37 = vpop.f32.mrf.mxu0 }
 0x102   : > { %v424_v38 = vpop.f32.mrf.mxu0 }
 0x103   : > { %v464_v58 = vmax.f32 %v424_v38, 0.0 }
 0x104   : > { %v734_v39 = vpop.f32.mrf.mxu0 }
 0x106   : > { %v429_v40 = vpop.f32.mrf.mxu0 }
 0x107   : > { %v465_v57 = vmax.f32 %v429_v40, 0.0 }
 0x108   : > { %v737_v41 = vpop.f32.mrf.mxu0 }
 0x10a   : > { %v434_v42 = vpop.f32.mrf.mxu0 }
 0x10b   : > { %v466_v56 = vmax.f32 %v434_v42, 0.0 }
 0x10c   : > { %v740_v43 = vpop.f32.mrf.mxu0 }
 0x10e   : > { %v439_v44 = vpop.f32.mrf.mxu0 }
 0x10f   : > { %v467_v55 = vmax.f32 %v439_v44, 0.0 }
 0x110   : > { %v743_v45 = vpop.f32.mrf.mxu0 }
 0x112   : > { %v444_v46 = vpop.f32.mrf.mxu0 }
 0x113   : > { %v468_v54 = vmax.f32 %v444_v46, 0.0 }
 0x114   : > { %v746_v47 = vpop.f32.mrf.mxu0 }
 0x116   : > { %v449_v48 = vpop.f32.mrf.mxu0 }
 0x117   : > { %v469_v53 = vmax.f32 %v449_v48, 0.0 }
 0x118   : > { %v749_v49 = vpop.f32.mrf.mxu0 }
 0x11a   : > { %v454_v50 = vpop.f32.mrf.mxu0 }
 0x11b   : > { %v470_v51 = vmax.f32 %v454_v50, 0.0 }
 0x11c   : > { %v752_v52 = vpop.f32.mrf.mxu0 }
 0x11d   : > { %754 = vmatpush3.msra.mxu1 %v470_v51 }
 0x11e   : > { %755 = vmatprep.subr.mxu1 %v840_v6 }
 0x11f   : > { %756 = vmatpush3.msra.mxu1 %v469_v53 }
 0x120   : > { %757 = vmatprep.subr.mxu1 %v840_v6 }
 0x121   : > { %758 = vmatpush3.msra.mxu1 %v468_v54 }
 0x122   : > { %759 = vmatprep.subr.mxu1 %v840_v6 }
 0x123   : > { %760 = vmatpush3.msra.mxu1 %v467_v55 }
 0x124   : > { %761 = vmatprep.subr.mxu1 %v840_v6 }
 0x125   : > { %762 = vmatpush3.msra.mxu1 %v466_v56 }
 0x126   : > { %763 = vmatprep.subr.mxu1 %v840_v6 }
 0x127   : > { %764 = vmatpush3.msra.mxu1 %v465_v57 }
 0x128   : > { %765 = vmatprep.subr.mxu1 %v840_v6 }
 0x129   : > { %766 = vmatpush3.msra.mxu1 %v464_v58 }
 0x12a   : > { %767 = vmatprep.subr.mxu1 %v840_v6 }
 0x12b   : > { %768 = vmatpush3.msra.mxu1 %v463_v59 }
 0x12c   : > { %769 = vmatprep.subr.mxu1 %v840_v6 }
 0x12d   : > { %770 = vmatpush3.msra.mxu1 %v462_v60 }
 0x12e   : > { %771 = vmatprep.subr.mxu1 %v840_v6 }
 0x12f   : > { %772 = vmatpush3.msra.mxu1 %v461_v61 }
 0x130   : > { %773 = vmatprep.subr.mxu1 %v840_v6 }
 0x131   : > { %774 = vmatpush3.msra.mxu1 %v460_v62 }
 0x132   : > { %775 = vmatprep.subr.mxu1 %v840_v6 }
 0x133   : > { %776 = vmatpush3.msra.mxu1 %v459_v63 }
 0x134   : > { %777 = vmatprep.subr.mxu1 %v840_v6 }
 0x135   : > { %778 = vmatpush3.msra.mxu1 %v458_v0 }
 0x136   : > { %780 = vmatmul.mubr.msk.f32.vlgmr.msra.gmra.mxu1 %vm472_vm3, %v471_v1 }
 0x1f6   : > { %v542_v3 = vpop.f32.mrf.mxu1 }
 0x1f7   : > { %v548_v4 = vsub.f32 %v542_v3, %v546_v2  ;;  %v547_v5 = vmax.f32 %v542_v3, %v546_v2  ;;  %v563_v18 = vrot.slane %v542_v3, 7 }
 0x1f8   : > { %v781_v7 = vpop.f32.mrf.mxu1 }
 0x1f9   : > { %v549_v8 = vand.u32 2147483647, %v548_v4  ;;  %vm551_vm4 = vcmp.eq.f32.partialorder %v547_v5, -inf  ;;  %v571_v22 = vsel %vm324_vm1, %v546_v2, %v563_v18 }
 0x1fb   : > { %v550_v6 = vsub.f32 0.0, %v549_v8 }
 0x1fd   : > { %v552_v9 = vsel %vm551_vm4, 0.0, %v550_v6 }
 0x1fe   : > { %v553_v10 = vmul.f32 1.442695, %v552_v9 }
 0x200   : > { %810 = vpow2.f32 %v553_v10 }
 0x20d   : > { %v811_v11 = vpop.eup %810 }
 0x20e   : > { %v555_v12 = vadd.f32 1.0, %v811_v11 }
 0x210   : > { %812 = vlog2.f32 %v555_v12 }
 0x21d   : > { %v813_v13 = vpop.eup %812 }
 0x21e   : > { %v557_v14 = vmul.f32 0.6931472, %v813_v13 }
 0x220   : > { %v558_v15 = vadd.f32 %v557_v14, %v547_v5 }
 0x222   : > { %v559_v16 = vsub.f32 %v542_v3, %v558_v15  ;;  %v566_v19 = vrot.slane %v558_v15, 6 }
 0x224   : > { %v560_v17 = vmul.f32 1.442695, %v559_v16  ;;  %v573_v23 = vsel %vm572_vm5, %v571_v22, %v566_v19 }
 0x226   : > { %814 = vpow2.f32 %v560_v17 }
 0x233   : > { %v815_v20 = vpop.eup %814 }
 0x234   : > { %v569_v21 = vrot.slane %v815_v20, 5 }
 0x236   : > { %v575_v24 = vsel %vm574_vm6, %v573_v23, %v569_v21 }
 0x237   : > { %576 = vst [vmem:[%s264_s24] sm:$0xf] %v575_v24 }
 0x238 PF: > { %p11_p9 = scmp.ge.s32.totalorder %s884_s19, 4   ;;  %s1040_s15 = smov %s834_s16 }
 0x239   : > { %s1041_s16 = smov %s893_s22  ;;  %s1042_s17 = smov %s884_s19 }
 0x23a   :  { %13 = sbr.rel (!%p11_p9) target bundleno = 2 (0x2), region = 112 }

</bundles_post_ra>
